<compile_context>
chip_gen: v7x
topology: tpu7x:2x2x1
jax: 0.10.0
libtpu: 0.0.40
codegen_flags: <defaults>
</compile_context>

<pallas_src>
import functools

import jax
import jax.numpy as jnp
from jax import lax
from jax.experimental import pallas as pl
from jax.experimental.pallas import tpu as pltpu


def _round_up(x, m):
    return ((x + m - 1) // m) * m


def _device_kind():
    try:
        return jax.devices()[0].device_kind.lower()
    except Exception:
        return ""


def _loss_kernel(p1_ref, p2_ref, emp_ref, out_ref, acc_ref, *,
                 n_rows, n_cols, tile_rows, lane_tile, tiles_per_core):
    c = pl.program_id(0)      # core-split index (CORE_PARALLEL on v7x)
    j = pl.program_id(1)      # lane-tile index ("arbitrary")
    i = pl.program_id(2)      # row-tile index within this core ("arbitrary")

    @pl.when(jnp.logical_and(j == 0, i == 0))
    def _():
        acc_ref[...] = jnp.zeros_like(acc_ref)

    # In-kernel cast: stream native dtype from HBM, compute in f32 on the VPU.
    p1 = p1_ref[...].astype(jnp.float32)
    p2 = p2_ref[...].astype(jnp.float32)
    emp = emp_ref[...].astype(jnp.float32)

    # One EUP log per element instead of two.  NOTE: p1*p2 only underflows f32
    # when both probabilities are < ~1e-19; keep separate logs if that regime
    # is real for the caller.
    contrib = emp * jnp.log(p1 * p2)

    t = c * tiles_per_core + i           # un-clamped linear row-tile index
    row0 = t * tile_rows
    col0 = j * lane_tile
    interior = jnp.logical_and(row0 + tile_rows <= n_rows,
                               col0 + lane_tile <= n_cols)

    def accumulate(x):
        # vreg-wise accumulation: (tile_rows, lane_tile) -> (_, 8, lane_tile)
        # and add the leading axis -- pure VPU, no per-step XLU reduction.
        acc_ref[...] += x.reshape(-1, 8, x.shape[-1]).sum(axis=0)

    @pl.when(interior)
    def _():
        accumulate(contrib)

    @pl.when(jnp.logical_not(interior))
    def _():
        # Boundary / clamped tiles only: mask padded rows and columns.
        # jnp.where discards any NaN/Inf from log() of padded garbage.
        rows = lax.broadcasted_iota(jnp.int32, (tile_rows, 1), 0) + row0
        cols = lax.broadcasted_iota(jnp.int32, (1, lane_tile), 1) + col0
        mask = jnp.logical_and(rows < n_rows, cols < n_cols)
        accumulate(jnp.where(mask, contrib, 0.0))

    @pl.when(jnp.logical_and(j == pl.num_programs(1) - 1,
                             i == pl.num_programs(2) - 1))
    def _():
        out_ref[...] = (-jnp.sum(acc_ref[...])).reshape(1, 1, 1)


def first_order_loss(first_order_combine_p, second_order_combine_p, emp_distri,
                     *, tile_rows=None, lane_tile=None, core_splits=None):
    """loss = -sum(emp*log(p1)) - sum(emp*log(p2)).  bf16 inputs are welcome
    (cast to f32 happens in VMEM), which roughly halves HBM traffic."""
    p1, p2, emp = first_order_combine_p, second_order_combine_p, emp_distri
    assert p1.shape == p2.shape == emp.shape

    # Flatten to 2-D keeping the last (lane) axis; the loss is a full reduce.
    if p1.ndim == 1:
        p1, p2, emp = (x.reshape(1, -1) for x in (p1, p2, emp))
    elif p1.ndim > 2:
        p1, p2, emp = (x.reshape(-1, x.shape[-1]) for x in (p1, p2, emp))

    R, C = p1.shape
    itemsize = max(jnp.dtype(x.dtype).itemsize for x in (p1, p2, emp))

    kind = _device_kind()
    is_v7 = "v7" in kind
    is_v6 = "v6" in kind

    # Generation-aware per-input block budget & scoped-VMEM limit.
    #   v6e: 128 MiB VMEM -> 4 MiB/input blocks, 96 MiB scoped limit.
    #   v7x: 64 MiB/TC    -> 2 MiB/input blocks, 48 MiB limit (headroom left).
    #   v5e / unknown     -> 2 MiB/input blocks, 64 MiB limit (16 MiB default
    #                        would choke on 3 inputs x 2 buffers x 2 MiB).
    if is_v6:
        target_bytes, vmem_limit = 4 << 20, 96 << 20
    elif is_v7:
        target_bytes, vmem_limit = 2 << 20, 48 << 20
    else:
        target_bytes, vmem_limit = 2 << 20, 64 << 20

    # Lane (C) tiling only when even 8 rows of full C blow the block budget.
    if lane_tile is None:
        if C * 8 * itemsize <= target_bytes:
            lane_tile = C
        else:
            lane_tile = max(128, (target_bytes // (8 * itemsize)) // 128 * 128)
    lane_tile = int(lane_tile)
    if lane_tile >= C:
        lane_tile = C
    else:
        lane_tile = max(128, (lane_tile // 128) * 128)
        if lane_tile >= C:
            lane_tile = C
    num_lane_tiles = pl.cdiv(C, lane_tile)

    if tile_rows is None:
        tile_rows = max(8, target_bytes // max(1, lane_tile * itemsize))
    tile_rows = _round_up(min(int(tile_rows), _round_up(R, 8)), 8)
    num_row_tiles = pl.cdiv(R, tile_rows)

    # Row split across TensorCores: only worth it on multi-TC chips (v7x).
    if core_splits is None:
        core_splits = 2 if is_v7 else 1
    core_splits = max(1, min(int(core_splits), num_row_tiles))
    tiles_per_core = pl.cdiv(num_row_tiles, core_splits)

    def in_map(c, j, i):
        t = c * tiles_per_core + i
        # Clamp fully-out-of-range tiles to the last valid block; their
        # contribution is masked to zero inside the kernel.
        return (jnp.minimum(t, num_row_tiles - 1), j)

    in_spec = pl.BlockSpec((tile_rows, lane_tile), in_map)

    kernel = functools.partial(
        _loss_kernel, n_rows=R, n_cols=C, tile_rows=tile_rows,
        lane_tile=lane_tile, tiles_per_core=tiles_per_core)

    n_elems = R * C
    cost = pl.CostEstimate(
        flops=3 * n_elems,                 # p1*p2, emp*log, accumulate
        transcendentals=n_elems,           # one fused log per element
        bytes_accessed=3 * n_elems * itemsize + 4 * core_splits)

    def call(core_sem):
        return pl.pallas_call(
            kernel,
            out_shape=jax.ShapeDtypeStruct((core_splits, 1, 1), jnp.float32),
            grid_spec=pltpu.PrefetchScalarGridSpec(
                num_scalar_prefetch=0,
                grid=(core_splits, num_lane_tiles, tiles_per_core),
                in_specs=[in_spec, in_spec, in_spec],
                out_specs=pl.BlockSpec((1, 1, 1), lambda c, j, i: (c, 0, 0)),
                scratch_shapes=[pltpu.VMEM((8, lane_tile), jnp.float32)],
            ),
            compiler_params=pltpu.CompilerParams(
                dimension_semantics=(core_sem, "arbitrary", "arbitrary"),
                vmem_limit_bytes=vmem_limit),
            cost_estimate=cost,
        )(p1, p2, emp)

    # On v7x, shard the leading row-split axis across both TensorCores so they
    # stream HBM concurrently; fall back to plain "parallel" if that lowering
    # is rejected on this jax/libtpu build.
    semantics = ["parallel"]
    if is_v7 and core_splits > 1 and hasattr(pltpu, "CORE_PARALLEL"):
        semantics.insert(0, pltpu.CORE_PARALLEL)

    partials, last_err = None, None
    for sem in semantics:
        try:
            partials = call(sem)
            break
        except Exception as e:             # lowering fallback only
            last_err = e
    if partials is None:
        raise last_err

    # Per-core partials (one per split) summed outside the kernel.
    return jnp.sum(partials)


if __name__ == "__main__":
    key = jax.random.PRNGKey(0)
    k1, k2, k3 = jax.random.split(key, 3)

    # Ragged row count AND a last dim that is not a multiple of 128: exercises
    # row-tail masking, column-tail masking under lane tiling, and core split.
    R, C = 300, 200
    p1 = jax.nn.sigmoid(jax.random.normal(k1, (R, C), jnp.float32))
    p2 = jax.nn.sigmoid(jax.random.normal(k2, (R, C), jnp.float32))
    emp = jax.nn.softmax(jax.random.normal(k3, (R, C), jnp.float32), axis=-1)

    ref = -jnp.sum(emp * jnp.log(p1)) - jnp.sum(emp * jnp.log(p2))

    # Default (auto) tiling: full-C blocks, generation-chosen core split.
    loss = jax.block_until_ready(first_order_loss(p1, p2, emp))
    assert jnp.allclose(loss, ref, rtol=1e-5, atol=1e-3), (loss, ref)

    # Small explicit tiles: multi row-tile sweep, lane tiling with a ragged
    # column tail, ragged row tail, and an explicit 2-way core split.
    loss2 = jax.block_until_ready(
        first_order_loss(p1, p2, emp, tile_rows=64, lane_tile=128,
                         core_splits=2))
    assert jnp.allclose(loss2, ref, rtol=1e-5, atol=1e-3), (loss2, ref)

    print("KERNEL_OK")
</pallas_src>

<mosaic_0001>
module attributes {stable_mosaic.version = 11 : i64} {
  func.func @_loss_kernel(%arg0: i32, %arg1: i32, %arg2: i32, %arg3: memref<304x200xf32, #tpu.memory_space<vmem>>, %arg4: memref<304x200xf32, #tpu.memory_space<vmem>>, %arg5: memref<304x200xf32, #tpu.memory_space<vmem>>, %arg6: memref<1x1x1xf32, #tpu.memory_space<vmem>>, %arg7: memref<8x200xf32, #tpu.memory_space<vmem>>) attributes {dimension_semantics = [#tpu.dimension_semantics<parallel>, #tpu.dimension_semantics<arbitrary>, #tpu.dimension_semantics<arbitrary>], iteration_bounds = array<i64: 1, 1, 1>, scalar_prefetch = 0 : i64, scratch_operands = 1 : i64, tpu.core_type = #tpu.core_type<tc>, window_params = [{transform_indices = @transform_0, window_bounds = array<i64: 304, 200>}, {transform_indices = @transform_1, window_bounds = array<i64: 304, 200>}, {transform_indices = @transform_2, window_bounds = array<i64: 304, 200>}, {transform_indices = @transform_3, window_bounds = array<i64: 1, 1, 1>}]} {
    %c0_i32 = arith.constant 0 : i32
    %0 = arith.cmpi eq, %arg1, %c0_i32 : i32
    %c0_i32_0 = arith.constant 0 : i32
    %1 = arith.cmpi eq, %arg2, %c0_i32_0 : i32
    %2 = arith.andi %0, %1 : i1
    %3 = arith.extui %2 : i1 to i32
    %c0_i32_1 = arith.constant 0 : i32
    %4 = arith.cmpi ne, %3, %c0_i32_1 : i32
    scf.if %4 {
      %cst = arith.constant 0.000000e+00 : f32
      %30 = vector.broadcast %cst : f32 to vector<8x200xf32>
      %c0_15 = arith.constant 0 : index
      %c0_16 = arith.constant 0 : index
      %31 = vector.load %arg7[%c0_15, %c0_16] : memref<8x200xf32, #tpu.memory_space<vmem>>, vector<8x200xf32>
      tpu.vector_store %arg7[%c0_15, %c0_16], %30 {strides = array<i32>} : memref<8x200xf32, #tpu.memory_space<vmem>>, vector<8x200xf32>,
    } else {
    }
    %c0 = arith.constant 0 : index
    %c0_2 = arith.constant 0 : index
    %5 = vector.load %arg3[%c0, %c0_2] : memref<304x200xf32, #tpu.memory_space<vmem>>, vector<304x200xf32>
    %c0_3 = arith.constant 0 : index
    %c0_4 = arith.constant 0 : index
    %6 = vector.load %arg4[%c0_3, %c0_4] : memref<304x200xf32, #tpu.memory_space<vmem>>, vector<304x200xf32>
    %c0_5 = arith.constant 0 : index
    %c0_6 = arith.constant 0 : index
    %7 = vector.load %arg5[%c0_5, %c0_6] : memref<304x200xf32, #tpu.memory_space<vmem>>, vector<304x200xf32>
    %8 = arith.mulf %5, %6 : vector<304x200xf32>
    %9 = math.log %8 : vector<304x200xf32>
    %10 = arith.mulf %7, %9 : vector<304x200xf32>
    %c1_i32 = arith.constant 1 : i32
    %11 = arith.muli %arg0, %c1_i32 : i32
    %12 = arith.addi %11, %arg2 : i32
    %c304_i32 = arith.constant 304 : i32
    %13 = arith.muli %12, %c304_i32 : i32
    %c200_i32 = arith.constant 200 : i32
    %14 = arith.muli %arg1, %c200_i32 : i32
    %c304_i32_7 = arith.constant 304 : i32
    %15 = arith.addi %13, %c304_i32_7 : i32
    %c300_i32 = arith.constant 300 : i32
    %16 = arith.cmpi sle, %15, %c300_i32 : i32
    %c200_i32_8 = arith.constant 200 : i32
    %17 = arith.addi %14, %c200_i32_8 : i32
    %c200_i32_9 = arith.constant 200 : i32
    %18 = arith.cmpi sle, %17, %c200_i32_9 : i32
    %19 = arith.andi %16, %18 : i1
    %20 = arith.extui %19 : i1 to i32
    %c0_i32_10 = arith.constant 0 : i32
    %21 = arith.cmpi ne, %20, %c0_i32_10 : i32
    scf.if %21 {
      %c0_15 = arith.constant 0 : index
      %c0_16 = arith.constant 0 : index
      %30 = vector.load %arg7[%c0_15, %c0_16] : memref<8x200xf32, #tpu.memory_space<vmem>>, vector<8x200xf32>
      %31 = vector.shape_cast %10 : vector<304x200xf32> to vector<38x8x200xf32>
      %cst = arith.constant dense<0.000000e+00> : vector<8x200xf32>
      %32 = vector.multi_reduction <add>, %31, %cst [0] : vector<38x8x200xf32> to vector<8x200xf32>
      %33 = arith.addf %30, %32 : vector<8x200xf32>
      %c0_17 = arith.constant 0 : index
      %c0_18 = arith.constant 0 : index
      %34 = vector.load %arg7[%c0_17, %c0_18] : memref<8x200xf32, #tpu.memory_space<vmem>>, vector<8x200xf32>
      tpu.vector_store %arg7[%c0_17, %c0_18], %33 {strides = array<i32>} : memref<8x200xf32, #tpu.memory_space<vmem>>, vector<8x200xf32>,
    } else {
    }
    %true = arith.constant true
    %22 = arith.xori %19, %true : i1
    %23 = arith.extui %22 : i1 to i32
    %c0_i32_11 = arith.constant 0 : i32
    %24 = arith.cmpi ne, %23, %c0_i32_11 : i32
    scf.if %24 {
      %30 = tpu.iota {dimensions = array<i32: 0>} : vector<304x1xi32>
      %31 = vector.broadcast %13 : i32 to vector<304x1xi32>
      %32 = arith.addi %30, %31 : vector<304x1xi32>
      %33 = tpu.iota {dimensions = array<i32: 1>} : vector<1x200xi32>
      %34 = vector.broadcast %14 : i32 to vector<1x200xi32>
      %35 = arith.addi %33, %34 : vector<1x200xi32>
      %c300_i32_15 = arith.constant 300 : i32
      %36 = vector.broadcast %c300_i32_15 : i32 to vector<304x1xi32>
      %37 = arith.cmpi slt, %32, %36 : vector<304x1xi32>
      %c200_i32_16 = arith.constant 200 : i32
      %38 = vector.broadcast %c200_i32_16 : i32 to vector<1x200xi32>
      %39 = arith.cmpi slt, %35, %38 : vector<1x200xi32>
      %40 = vector.broadcast %37 : vector<304x1xi1> to vector<304x200xi1>
      %41 = vector.broadcast %39 : vector<1x200xi1> to vector<304x200xi1>
      %42 = arith.andi %40, %41 : vector<304x200xi1>
      %cst = arith.constant 0.000000e+00 : f32
      %43 = vector.broadcast %cst : f32 to vector<304x200xf32>
      %44 = arith.select %42, %10, %43 : vector<304x200xi1>, vector<304x200xf32>
      %c0_17 = arith.constant 0 : index
      %c0_18 = arith.constant 0 : index
      %45 = vector.load %arg7[%c0_17, %c0_18] : memref<8x200xf32, #tpu.memory_space<vmem>>, vector<8x200xf32>
      %46 = vector.shape_cast %44 : vector<304x200xf32> to vector<38x8x200xf32>
      %cst_19 = arith.constant dense<0.000000e+00> : vector<8x200xf32>
      %47 = vector.multi_reduction <add>, %46, %cst_19 [0] : vector<38x8x200xf32> to vector<8x200xf32>
      %48 = arith.addf %45, %47 : vector<8x200xf32>
      %c0_20 = arith.constant 0 : index
      %c0_21 = arith.constant 0 : index
      %49 = vector.load %arg7[%c0_20, %c0_21] : memref<8x200xf32, #tpu.memory_space<vmem>>, vector<8x200xf32>
      tpu.vector_store %arg7[%c0_20, %c0_21], %48 {strides = array<i32>} : memref<8x200xf32, #tpu.memory_space<vmem>>, vector<8x200xf32>,
    } else {
    }
    %c0_i32_12 = arith.constant 0 : i32
    %25 = arith.cmpi eq, %arg1, %c0_i32_12 : i32
    %c0_i32_13 = arith.constant 0 : i32
    %26 = arith.cmpi eq, %arg2, %c0_i32_13 : i32
    %27 = arith.andi %25, %26 : i1
    %28 = arith.extui %27 : i1 to i32
    %c0_i32_14 = arith.constant 0 : i32
    %29 = arith.cmpi ne, %28, %c0_i32_14 : i32
    scf.if %29 {
      %c0_15 = arith.constant 0 : index
      %c0_16 = arith.constant 0 : index
      %30 = vector.load %arg7[%c0_15, %c0_16] : memref<8x200xf32, #tpu.memory_space<vmem>>, vector<8x200xf32>
      %31 = vector.shape_cast %30 : vector<8x200xf32> to vector<1x8x200xf32>
      %cst = arith.constant dense<0.000000e+00> : vector<1xf32>
      %32 = vector.multi_reduction <add>, %31, %cst [1, 2] : vector<1x8x200xf32> to vector<1xf32>
      %33 = vector.shape_cast %32 : vector<1xf32> to vector<1x1x1xf32>
      %34 = vector.extract %33[0, 0, 0] : f32 from vector<1x1x1xf32>
      %cst_17 = arith.constant 0.000000e+00 : f32
      %35 = arith.subf %cst_17, %34 : f32
      %36 = vector.broadcast %35 : f32 to vector<1x1x1xf32>
      %c0_18 = arith.constant 0 : index
      %c0_19 = arith.constant 0 : index
      %c0_20 = arith.constant 0 : index
      %37 = vector.load %arg6[%c0_18, %c0_19, %c0_20] : memref<1x1x1xf32, #tpu.memory_space<vmem>>, vector<1x1x1xf32>
      tpu.vector_store %arg6[%c0_18, %c0_19, %c0_20], %36 {strides = array<i32>} : memref<1x1x1xf32, #tpu.memory_space<vmem>>, vector<1x1x1xf32>,
    } else {
    }
    return
  }
  func.func @transform_0(%arg0: i32, %arg1: i32, %arg2: i32) -> (i32, i32) {
    %c1_i32 = arith.constant 1 : i32
    %0 = arith.muli %arg0, %c1_i32 : i32
    %1 = arith.addi %0, %arg2 : i32
    %c0_i32 = arith.constant 0 : i32
    %2 = arith.minsi %1, %c0_i32 : i32
    %c0_i32_0 = arith.constant 0 : i32
    return %2, %arg1 : i32, i32
  }
  func.func @transform_1(%arg0: i32, %arg1: i32, %arg2: i32) -> (i32, i32) {
    %c1_i32 = arith.constant 1 : i32
    %0 = arith.muli %arg0, %c1_i32 : i32
    %1 = arith.addi %0, %arg2 : i32
    %c0_i32 = arith.constant 0 : i32
    %2 = arith.minsi %1, %c0_i32 : i32
    %c0_i32_0 = arith.constant 0 : i32
    return %2, %arg1 : i32, i32
  }
  func.func @transform_2(%arg0: i32, %arg1: i32, %arg2: i32) -> (i32, i32) {
    %c1_i32 = arith.constant 1 : i32
    %0 = arith.muli %arg0, %c1_i32 : i32
    %1 = arith.addi %0, %arg2 : i32
    %c0_i32 = arith.constant 0 : i32
    %2 = arith.minsi %1, %c0_i32 : i32
    %c0_i32_0 = arith.constant 0 : i32
    return %2, %arg1 : i32, i32
  }
  func.func @transform_3(%arg0: i32, %arg1: i32, %arg2: i32) -> (i32, i32, i32) {
    %c0_i32 = arith.constant 0 : i32
    %c0_i32_0 = arith.constant 0 : i32
    %c0_i32_1 = arith.constant 0 : i32
    return %arg0, %c0_i32, %c0_i32_0 : i32, i32, i32
  }
}

</mosaic_0001>

<bundles_post_ra>
// kernel: tpu_custom_call.1
= control target key start
LH: loop header
LB: loop body
LE: loop exit
PB: predicated region body
PF: predicated region fallthrough
CT: control target
= control target key end

     0   :  { %8 = vsyncpa [#allocation4], 0  ;;  %s1843_s0 = inlined_call_operand.hbm [shape: f32[300,200], index: 0, kind: input, shape index: {}]   ;;  %s1844_s1 = inlined_call_operand.hbm [shape: f32[300,200], index: 1, kind: input, shape index: {}]   ;;  %s1845_s2 = inlined_call_operand.hbm [shape: f32[300,200], index: 2, kind: input, shape index: {}]   ;;  %s1846_s3 = inlined_call_operand.hbm [shape: f32[1,1,1], index: 3, kind: output, shape index: {}]  }
   0x1   :  { %9 = vsyncpa [#allocation7], 0 }
   0x2   :  { %10 = vsyncpa [#allocation5], 0  ;;  %s1535_s12 = smov [#allocation6]   ;;  %s1536_s14 = smov [#allocation3]  }
   0x3   :  { %s42_s13 = sshll.u32 %s1535_s12, 4  ;;  %s23_s15 = sshll.u32 %s1536_s14, 4  ;;  %s43_s13 = int_to_ptr.vmem [resolvable:$true] %s42_s13  ;;  %s1562_s15 = int_to_ptr.vmem [resolvable:$true] %s23_s15 }
   0x4   :  { %s1441_s18 = scalar_lea.hbm %s1844_s1, 9728 }
   0x5   :  { %p1442_p0 = scmp.ne.s32.totalorder %s1844_s1, %s1441_s18  ;;  %p1445_p1 = scmp.lt.u32.totalorder %s1441_s18, %s1844_s1 }
   0x7   :  { %p1447_p2 = pnand %p1445_p1, %p1442_p0 }
   0x9   :  { %1450 = shalt.err (!%p1447_p2)
}
   0xa   :  { %s1451_s23 = scalar_lea.vmem %s43_s13, 9728  ;;  %p1456_p4 = scmp.lt.s32.totalorder %s43_s13, %s43_s13 }
   0xb   :  { %p1452_p3 = scmp.ne.s32.totalorder %s43_s13, %s1451_s23  ;;  %p1457_p5 = scmp.lt.s32.totalorder %s1451_s23, %s1451_s23 }
   0xd   :  { %p1458_p6 = por %p1457_p5, %p1456_p4 }
   0xf   :  { %p1459_p7 = pnand %p1458_p6, %p1452_p3 }
  0x11   :  { %1462 = shalt.err (!%p1459_p7)
}
  0x12   :  { %s1537_s24 = smov 256   ;;  %s1538_s25 = smov 16  }
  0x13   :  { %48 = dma.hbm_to_vmem [thread:$0]  %s1844_s1, 9728, %s43_s13, [#allocation7], %s1537_s24, %s1537_s24, %s1538_s25  }
  0x14   :  { %s1463_s30 = scalar_lea.hbm %s1843_s0, 9728 }
  0x15   :  { %p1464_p8 = scmp.ne.s32.totalorder %s1843_s0, %s1463_s30  ;;  %p1467_p9 = scmp.lt.u32.totalorder %s1463_s30, %s1843_s0 }
  0x17   :  { %p1469_p10 = pnand %p1467_p9, %p1464_p8 }
  0x19   :  { %1472 = shalt.err (!%p1469_p10)
}
  0x1a   :  { %s1473_s8 = scalar_lea.vmem %s1562_s15, 9728  ;;  %p1478_p12 = scmp.lt.s32.totalorder %s1562_s15, %s1562_s15 }
  0x1b   :  { %p1474_p11 = scmp.ne.s32.totalorder %s1562_s15, %s1473_s8  ;;  %p1479_p13 = scmp.lt.s32.totalorder %s1473_s8, %s1473_s8 }
  0x1d   :  { %p1480_p0 = por %p1479_p13, %p1478_p12 }
  0x1f   :  { %p1481_p1 = pnand %p1480_p0, %p1474_p11 }
  0x21   :  { %1484 = shalt.err (!%p1481_p1)
}
  0x22   :  { %29 = dma.hbm_to_vmem [thread:$0]  %s1843_s0, 9728, %s1562_s15, [#allocation4], %s1537_s24, %s1537_s24, %s1538_s25  }
  0x23   :  { %s1539_s10 = smov [#allocation8]   ;;  %s1485_s14 = scalar_lea.hbm %s1845_s2, 9728 }
  0x24   :  { %s61_s11 = sshll.u32 %s1539_s10, 4  ;;  %p1486_p2 = scmp.ne.s32.totalorder %s1845_s2, %s1485_s14  ;;  %s62_s11 = int_to_ptr.vmem [resolvable:$true] %s61_s11 }
  0x25   :  { %p1489_p3 = scmp.lt.u32.totalorder %s1485_s14, %s1845_s2 }
  0x27   :  { %p1491_p4 = pnand %p1489_p3, %p1486_p2 }
  0x29   :  { %1494 = shalt.err (!%p1491_p4)
}
  0x2a   :  { %s1495_s20 = scalar_lea.vmem %s62_s11, 9728  ;;  %p1500_p6 = scmp.lt.s32.totalorder %s62_s11, %s62_s11 }
  0x2b   :  { %p1496_p5 = scmp.ne.s32.totalorder %s62_s11, %s1495_s20  ;;  %p1501_p7 = scmp.lt.s32.totalorder %s1495_s20, %s1495_s20 }
  0x2d   :  { %p1502_p8 = por %p1501_p7, %p1500_p6 }
  0x2f   :  { %p1503_p9 = pnand %p1502_p8, %p1496_p5 }
  0x31   :  { %1506 = shalt.err (!%p1503_p9)
}
  0x32   :  { %67 = dma.hbm_to_vmem [thread:$0]  %s1845_s2, 9728, %s62_s11, [#allocation7], %s1537_s24, %s1537_s24, %s1538_s25  }
  0x33   :  { %1529 = dma.done.wait [#allocation4], 9728  }
  0x34   :  { %1530 = vsyncadd [#allocation4], 4294957568 }
  0x35   :  { %1531 = dma.done.wait [#allocation7], 19456  }
  0x36   :  { %1532 = vsyncadd [#allocation7], 4294947840  ;;  %vm96_vm0 = vcmask 588800   ;;  %v1540_v0 = vmov 0.0   ;;  %v98_v1 = vld [vmem:[#allocation3] sm:$0xff]  ;;  %v100_v3 = vld [vmem:[#allocation3 + $0x10] sm:$0xff]  ;;  %v763_v36 = vlaneseq }
  0x37   :  { %97 = vst.msk [vmem:[#allocation2 + $0x8] sm:$0xff] %vm96_vm0, %v1540_v0  ;;  %v174_v2 = vld [vmem:[#allocation6] sm:$0xff]  ;;  %v176_v4 = vld [vmem:[#allocation6 + $0x10] sm:$0xff]  ;;  %v99_v46 = vld [vmem:[#allocation3 + $0x8] sm:$0xff]  ;;  %s1541_s2 = smov [#allocation9]   ;;  %vm1256_vm4 = vcmask 0  }
  0x38   :  { %v102_v5 = vld [vmem:[#allocation3 + $0x20] sm:$0xff]  ;;  %v326_v7 = vmul.f32 %v174_v2, %v98_v1  ;;  %v328_v8 = vmul.f32 %v176_v4, %v100_v3  ;;  %v104_v9 = vld [vmem:[#allocation3 + $0x30] sm:$0xff]  ;;  %v764_v45 = vshrl.u32 %v763_v36, 7  ;;  %v101_v47 = vld [vmem:[#allocation3 + $0x18] sm:$0xff]  ;;  %v842_v55 = vand.u32 127, %v763_v36  ;;  %s1264_s21 = sshll.u32 %s1541_s2, 4  ;;  %s1265_s21 = int_to_ptr.vmem [resolvable:$true] %s1264_s21 }
  0x39   :  { %v178_v6 = vld [vmem:[#allocation6 + $0x20] sm:$0xff]  ;;  %v180_v10 = vld [vmem:[#allocation6 + $0x30] sm:$0xff]  ;;  %v175_v48 = vld [vmem:[#allocation6 + $0x8] sm:$0xff]  ;;  %s1507_s24 = scalar_lea.vmem %s1265_s21, 16  ;;  %s1511_s25 = scalar_lea.vmem %s1265_s21, 32 }
  0x3a   :  { %v330_v11 = vmul.f32 %v178_v6, %v102_v5  ;;  %v106_v12 = vld [vmem:[#allocation3 + $0x40] sm:$0xff]  ;;  %1289 = vlog2.f32 %v326_v7  ;;  %v332_v14 = vmul.f32 %v180_v10, %v104_v9  ;;  %v108_v15 = vld [vmem:[#allocation3 + $0x50] sm:$0xff]  ;;  %v103_v57 = vld [vmem:[#allocation3 + $0x28] sm:$0xff]  ;;  %v327_v4 = vmul.f32 %v175_v48, %v99_v46  ;;  %p1508_p10 = scmp.ne.s32.totalorder %s1265_s21, %s1507_s24  ;;  %p1512_p11 = scmp.lt.s32.totalorder %s1265_s21, %s1265_s21 }
  0x3b   :  { %v182_v13 = vld [vmem:[#allocation6 + $0x40] sm:$0xff]  ;;  %1291 = vlog2.f32 %v328_v8  ;;  %v184_v16 = vld [vmem:[#allocation6 + $0x50] sm:$0xff]  ;;  %v105_v58 = vld [vmem:[#allocation3 + $0x38] sm:$0xff]  ;;  %v1615_v5 = vadd.s32 296, %v764_v45  ;;  %p1513_p12 = scmp.lt.s32.totalorder %s1511_s25, %s1507_s24 }
  0x3c   :  { %v334_v17 = vmul.f32 %v182_v13, %v106_v12  ;;  %1293 = vlog2.f32 %v330_v11  ;;  %v336_v18 = vmul.f32 %v184_v16, %v108_v15  ;;  %v110_v19 = vld [vmem:[#allocation3 + $0x60] sm:$0xff]  ;;  %v112_v23 = vld [vmem:[#allocation3 + $0x70] sm:$0xff]  ;;  %v107_v59 = vld [vmem:[#allocation3 + $0x48] sm:$0xff] }
  0x3d   :  { %1295 = vlog2.f32 %v332_v14  ;;  %v186_v20 = vld [vmem:[#allocation6 + $0x60] sm:$0xff]  ;;  %v188_v24 = vld [vmem:[#allocation6 + $0x70] sm:$0xff]  ;;  %v177_v60 = vld [vmem:[#allocation6 + $0x18] sm:$0xff]  ;;  %vm884_vm2 = vcmp.lt.s32.totalorder %v1615_v5, 300  ;;  %p1514_p13 = por %p1513_p12, %p1512_p11 }
  0x3e   :  { %1297 = vlog2.f32 %v334_v17  ;;  %v338_v25 = vmul.f32 %v186_v20, %v110_v19  ;;  %v114_v27 = vld [vmem:[#allocation3 + $0x80] sm:$0xff]  ;;  %v116_v29 = vld [vmem:[#allocation3 + $0x90] sm:$0xff]  ;;  %v340_v31 = vmul.f32 %v188_v24, %v112_v23  ;;  %v109_v0 = vld [vmem:[#allocation3 + $0x58] sm:$0xff]  ;;  %v329_v17 = vmul.f32 %v177_v60, %v101_v47 }
  0x3f   :  { %1299 = vlog2.f32 %v336_v18  ;;  %v190_v28 = vld [vmem:[#allocation6 + $0x80] sm:$0xff]  ;;  %v192_v30 = vld [vmem:[#allocation6 + $0x90] sm:$0xff]  ;;  %v111_v6 = vld [vmem:[#allocation3 + $0x68] sm:$0xff]  ;;  %v1617_v19 = vadd.s32 128, %v842_v55  ;;  %p1515_p0 = pnand %p1514_p13, %p1508_p10 }
  0x40   :  { %v250_v35 = vld [vmem:[#allocation8] sm:$0xff]  ;;  %v252_v37 = vld [vmem:[#allocation8 + $0x10] sm:$0xff]  ;;  %v342_v38 = vmul.f32 %v190_v28, %v114_v27  ;;  %1301 = vlog2.f32 %v338_v25  ;;  %v344_v44 = vmul.f32 %v192_v30, %v116_v29  ;;  %v179_v7 = vld [vmem:[#allocation6 + $0x28] sm:$0xff] }
  0x41   :  { %v118_v41 = vld [vmem:[#allocation3 + $0xa0] sm:$0xff]  ;;  %1303 = vlog2.f32 %v340_v31  ;;  %v120_v52 = vld [vmem:[#allocation3 + $0xb0] sm:$0xff]  ;;  %v181_v8 = vld [vmem:[#allocation6 + $0x38] sm:$0xff]  ;;  %v331_v31 = vmul.f32 %v179_v7, %v103_v57  ;;  %vm886_vm1 = vcmp.lt.s32.totalorder %v1617_v19, 200 }
  0x42   :  { %v194_v42 = vld [vmem:[#allocation6 + $0xa0] sm:$0xff]  ;;  %v196_v53 = vld [vmem:[#allocation6 + $0xb0] sm:$0xff]  ;;  %1305 = vlog2.f32 %v342_v38  ;;  %v183_v9 = vld [vmem:[#allocation6 + $0x48] sm:$0xff] }
  0x43   :  { %v254_v43 = vld [vmem:[#allocation8 + $0x20] sm:$0xff]  ;;  %v256_v54 = vld [vmem:[#allocation8 + $0x30] sm:$0xff]  ;;  %v346_v61 = vmul.f32 %v194_v42, %v118_v41  ;;  %v348_v10 = vmul.f32 %v196_v53, %v120_v52  ;;  %1307 = vlog2.f32 %v344_v44  ;;  %v113_v13 = vld [vmem:[#allocation3 + $0x78] sm:$0xff] }
  0x44   :  { %v1290_v21 = vpop.eup %1289  ;;  %v122_v1 = vld [vmem:[#allocation3 + $0xc0] sm:$0xff]  ;;  %v124_v14 = vld [vmem:[#allocation3 + $0xd0] sm:$0xff]  ;;  %v185_v15 = vld [vmem:[#allocation6 + $0x58] sm:$0xff] }
  0x45   :  { %v1292_v22 = vpop.eup %1291  ;;  %v403_v32 = vmul.f32 0.6931472, %v1290_v21  ;;  %v198_v2 = vld [vmem:[#allocation6 + $0xc0] sm:$0xff]  ;;  %v200_v16 = vld [vmem:[#allocation6 + $0xd0] sm:$0xff]  ;;  %v115_v20 = vld [vmem:[#allocation3 + $0x88] sm:$0xff]  ;;  %1309 = vlog2.f32 %v346_v61 }
  0x46   :  { %v1294_v26 = vpop.eup %1293  ;;  %v407_v33 = vmul.f32 0.6931472, %v1292_v22  ;;  %v258_v3 = vld [vmem:[#allocation8 + $0x40] sm:$0xff]  ;;  %v187_v21 = vld [vmem:[#allocation6 + $0x68] sm:$0xff]  ;;  %v260_v22 = vld [vmem:[#allocation8 + $0x50] sm:$0xff]  ;;  %v350_v23 = vmul.f32 %v198_v2, %v122_v1  ;;  %1311 = vlog2.f32 %v327_v4 }
  0x47   :  { %v1296_v34 = vpop.eup %1295  ;;  %v411_v39 = vmul.f32 0.6931472, %v1294_v26  ;;  %v554_v50 = vmul.f32 %v403_v32, %v250_v35  ;;  %v117_v26 = vld [vmem:[#allocation3 + $0x98] sm:$0xff]  ;;  %v119_v27 = vld [vmem:[#allocation3 + $0xa8] sm:$0xff]  ;;  %v126_v28 = vld [vmem:[#allocation3 + $0xe0] sm:$0xff]  ;;  %v1619_v32 = vmul.f32 %v181_v8, %v105_v58  ;;  %1313 = vlog2.f32 %v348_v10 }
  0x48   :  { %v1298_v40 = vpop.eup %1297  ;;  %v415_v49 = vmul.f32 0.6931472, %v1296_v34  ;;  %v556_v51 = vmul.f32 %v407_v33, %v252_v37  ;;  %v189_v29 = vld [vmem:[#allocation6 + $0x78] sm:$0xff]  ;;  %v202_v30 = vld [vmem:[#allocation6 + $0xe0] sm:$0xff]  ;;  %v1621_v33 = vmul.f32 %v183_v9, %v107_v59  ;;  %v128_v36 = vld [vmem:[#allocation3 + $0xf0] sm:$0xff]  ;;  %v1625_v47 = vmul.f32 %v187_v21, %v111_v6 }
  0x49   :  { %v1300_v56 = vpop.eup %1299  ;;  %v419_v62 = vmul.f32 0.6931472, %v1298_v40  ;;  %v558_v63 = vmul.f32 %v411_v39, %v254_v43  ;;  %v121_v35 = vld [vmem:[#allocation3 + $0xb8] sm:$0xff]  ;;  %v191_v37 = vld [vmem:[#allocation6 + $0x88] sm:$0xff]  ;;  %v262_v38 = vld [vmem:[#allocation8 + $0x60] sm:$0xff]  ;;  %v1623_v39 = vmul.f32 %v185_v15, %v109_v0  ;;  %v352_v40 = vmul.f32 %v200_v16, %v124_v14 }
  0x4a   :  { %v560_v11 = vmul.f32 %v415_v49, %v256_v54  ;;  %v1121_v12 = vadd.f32 %v556_v51, %v554_v50  ;;  %v423_v18 = vmul.f32 0.6931472, %v1300_v56  ;;  %v1302_v34 = vpop.eup %1301  ;;  %v123_v42 = vld [vmem:[#allocation3 + $0xc8] sm:$0xff]  ;;  %v125_v43 = vld [vmem:[#allocation3 + $0xd8] sm:$0xff]  ;;  %v204_v46 = vld [vmem:[#allocation6 + $0xf0] sm:$0xff]  ;;  %1315 = vlog2.f32 %v329_v17 }
  0x4b   :  { %v562_v24 = vmul.f32 %v419_v62, %v258_v3  ;;  %v193_v44 = vld [vmem:[#allocation6 + $0x98] sm:$0xff]  ;;  %v195_v45 = vld [vmem:[#allocation6 + $0xa8] sm:$0xff]  ;;  %v427_v48 = vmul.f32 0.6931472, %v1302_v34  ;;  %v1304_v50 = vpop.eup %1303  ;;  %v130_v51 = vld [vmem:[#allocation3 + $0x100] sm:$0xff]  ;;  %v1627_v54 = vmul.f32 %v189_v29, %v113_v13  ;;  %v354_v55 = vmul.f32 %v202_v30, %v126_v28 }
  0x4c   :  { %v1122_v25 = vadd.f32 %v1121_v12, %v558_v63  ;;  %v564_v49 = vmul.f32 %v423_v18, %v260_v22  ;;  %v197_v52 = vld [vmem:[#allocation6 + $0xb8] sm:$0xff]  ;;  %v264_v53 = vld [vmem:[#allocation8 + $0x70] sm:$0xff]  ;;  %1317 = vlog2.f32 %v350_v23  ;;  %v127_v57 = vld [vmem:[#allocation3 + $0xe8] sm:$0xff]  ;;  %v1629_v61 = vmul.f32 %v191_v37, %v115_v20  ;;  %v1306_v0 = vpop.eup %1305 }
  0x4d   :  { %v199_v58 = vld [vmem:[#allocation6 + $0xc8] sm:$0xff]  ;;  %v201_v59 = vld [vmem:[#allocation6 + $0xd8] sm:$0xff]  ;;  %v206_v60 = vld [vmem:[#allocation6 + $0x100] sm:$0xff]  ;;  %1319 = vlog2.f32 %v331_v31  ;;  %v431_v62 = vmul.f32 0.6931472, %v1304_v50  ;;  %v566_v63 = vmul.f32 %v427_v48, %v262_v38  ;;  %v1631_v4 = vmul.f32 %v193_v44, %v117_v26  ;;  %v1308_v17 = vpop.eup %1307 }
  0x4e   :  { %v1123_v41 = vadd.f32 %v1122_v25, %v560_v11  ;;  %v129_v1 = vld [vmem:[#allocation3 + $0xf8] sm:$0xff]  ;;  %v132_v2 = vld [vmem:[#allocation3 + $0x110] sm:$0xff]  ;;  %v266_v3 = vld [vmem:[#allocation8 + $0x80] sm:$0xff]  ;;  %v1633_v6 = vmul.f32 %v195_v45, %v119_v27  ;;  %v356_v7 = vmul.f32 %v204_v46, %v128_v36  ;;  %1321 = vlog2.f32 %v352_v40 }
  0x4f   :  { %v131_v8 = vld [vmem:[#allocation3 + $0x108] sm:$0xff]  ;;  %v133_v9 = vld [vmem:[#allocation3 + $0x118] sm:$0xff]  ;;  %v208_v12 = vld [vmem:[#allocation6 + $0x110] sm:$0xff]  ;;  %v1635_v13 = vmul.f32 %v197_v52, %v121_v35  ;;  %v435_v14 = vmul.f32 0.6931472, %v1306_v0  ;;  %v568_v15 = vmul.f32 %v431_v62, %v264_v53  ;;  %v1637_v22 = vmul.f32 %v199_v58, %v123_v42  ;;  %v1310_v36 = vpop.eup %1309 }
  0x50   :  { %v1124_v56 = vadd.f32 %v1123_v41, %v562_v24  ;;  %v203_v10 = vld [vmem:[#allocation6 + $0xe8] sm:$0xff]  ;;  %v205_v11 = vld [vmem:[#allocation6 + $0xf8] sm:$0xff]  ;;  %v134_v18 = vld [vmem:[#allocation3 + $0x120] sm:$0xff]  ;;  %v1639_v23 = vmul.f32 %v201_v59, %v125_v43  ;;  %v358_v24 = vmul.f32 %v206_v60, %v130_v51  ;;  %1323 = vlog2.f32 %v354_v55  ;;  %v1312_v44 = vpop.eup %1311 }
  0x51   :  { %v135_v20 = vld [vmem:[#allocation3 + $0x128] sm:$0xff]  ;;  %v268_v21 = vld [vmem:[#allocation8 + $0x90] sm:$0xff]  ;;  %v137_v26 = vld [vmem:[#allocation3 + $0x138] sm:$0xff]  ;;  %1325 = vlog2.f32 %v1619_v32  ;;  %v439_v31 = vmul.f32 0.6931472, %v1308_v17  ;;  %v570_v34 = vmul.f32 %v435_v14, %v266_v3  ;;  %v1642_v41 = vmul.f32 %v203_v10, %v127_v57  ;;  %v1314_v53 = vpop.eup %1313 }
  0x52   :  { %v1125_v16 = vadd.f32 %v1124_v56, %v564_v49  ;;  %v136_v25 = vld [vmem:[#allocation3 + $0x130] sm:$0xff]  ;;  %v138_v27 = vld [vmem:[#allocation3 + $0x140] sm:$0xff]  ;;  %v207_v28 = vld [vmem:[#allocation6 + $0x108] sm:$0xff]  ;;  %v1644_v42 = vmul.f32 %v205_v11, %v129_v1  ;;  %v360_v43 = vmul.f32 %v208_v12, %v132_v2  ;;  %1327 = vlog2.f32 %v356_v7 }
  0x53   :  { %v209_v29 = vld [vmem:[#allocation6 + $0x118] sm:$0xff]  ;;  %v210_v30 = vld [vmem:[#allocation6 + $0x120] sm:$0xff]  ;;  %v139_v37 = vld [vmem:[#allocation3 + $0x148] sm:$0xff]  ;;  %1329 = vlog2.f32 %v1621_v33  ;;  %v443_v32 = vmul.f32 0.6931472, %v1310_v36  ;;  %v572_v51 = vmul.f32 %v439_v31, %v268_v21  ;;  %v1647_v58 = vmul.f32 %v207_v28, %v131_v8 }
  0x54   :  { %v1126_v35 = vadd.f32 %v1125_v16, %v566_v63  ;;  %v211_v38 = vld [vmem:[#allocation6 + $0x128] sm:$0xff]  ;;  %v270_v40 = vld [vmem:[#allocation8 + $0xa0] sm:$0xff]  ;;  %v140_v45 = vld [vmem:[#allocation3 + $0x150] sm:$0xff]  ;;  %v1649_v59 = vmul.f32 %v209_v29, %v133_v9  ;;  %v362_v60 = vmul.f32 %v210_v30, %v134_v18  ;;  %1331 = vlog2.f32 %v358_v24  ;;  %v1316_v62 = vpop.eup %1315 }
  0x55   :  { %v141_v46 = vld [vmem:[#allocation3 + $0x158] sm:$0xff]  ;;  %v212_v48 = vld [vmem:[#allocation6 + $0x130] sm:$0xff]  ;;  %v214_v50 = vld [vmem:[#allocation6 + $0x140] sm:$0xff]  ;;  %v1651_v3 = vmul.f32 %v211_v38, %v135_v20  ;;  %v447_v33 = vmul.f32 0.6931472, %v1314_v53  ;;  %v574_v7 = vmul.f32 %v443_v32, %v270_v40  ;;  %1333 = vlog2.f32 %v360_v43 }
  0x56   :  { %v213_v49 = vld [vmem:[#allocation6 + $0x138] sm:$0xff]  ;;  %v1127_v52 = vadd.f32 %v1126_v35, %v568_v15  ;;  %v142_v55 = vld [vmem:[#allocation3 + $0x160] sm:$0xff]  ;;  %v215_v56 = vld [vmem:[#allocation6 + $0x148] sm:$0xff]  ;;  %v1318_v11 = vpop.eup %1317  ;;  %v364_v8 = vmul.f32 %v212_v48, %v136_v25  ;;  %v366_v9 = vmul.f32 %v214_v50, %v138_v27  ;;  %v405_v25 = vmul.f32 0.6931472, %v1312_v44 }
  0x57   :  { %v272_v57 = vld [vmem:[#allocation8 + $0xb0] sm:$0xff]  ;;  %v143_v63 = vld [vmem:[#allocation3 + $0x168] sm:$0xff]  ;;  %v217_v2 = vld [vmem:[#allocation6 + $0x158] sm:$0xff]  ;;  %v1653_v16 = vmul.f32 %v213_v49, %v137_v26  ;;  %v1320_v17 = vpop.eup %1319  ;;  %v1655_v28 = vmul.f32 %v215_v56, %v139_v37  ;;  %v451_v20 = vmul.f32 0.6931472, %v1318_v11  ;;  %1335 = vlog2.f32 %v362_v60 }
  0x58   :  { %v144_v0 = vld [vmem:[#allocation3 + $0x170] sm:$0xff]  ;;  %v1128_v10 = vadd.f32 %v1127_v52, %v570_v34  ;;  %v145_v12 = vld [vmem:[#allocation3 + $0x178] sm:$0xff]  ;;  %v218_v14 = vld [vmem:[#allocation6 + $0x160] sm:$0xff]  ;;  %v576_v29 = vmul.f32 %v447_v33, %v272_v57  ;;  %v1322_v31 = vpop.eup %1321  ;;  %v1657_v38 = vmul.f32 %v217_v2, %v141_v46  ;;  %1337 = vlog2.f32 %v364_v8 }
  0x59   :  { %v216_v1 = vld [vmem:[#allocation6 + $0x150] sm:$0xff]  ;;  %v274_v15 = vld [vmem:[#allocation8 + $0xc0] sm:$0xff]  ;;  %v219_v18 = vld [vmem:[#allocation6 + $0x168] sm:$0xff]  ;;  %v370_v43 = vmul.f32 %v218_v14, %v142_v55  ;;  %v455_v48 = vmul.f32 0.6931472, %v1322_v31  ;;  %1339 = vlog2.f32 %v1623_v39 }
  0x5a   :  { %v220_v21 = vld [vmem:[#allocation6 + $0x170] sm:$0xff]  ;;  %v221_v24 = vld [vmem:[#allocation6 + $0x178] sm:$0xff]  ;;  %v1129_v30 = vadd.f32 %v1128_v10, %v572_v51  ;;  %v146_v34 = vld [vmem:[#allocation3 + $0x180] sm:$0xff]  ;;  %v368_v36 = vmul.f32 %v216_v1, %v140_v45  ;;  %v578_v37 = vmul.f32 %v451_v20, %v274_v15  ;;  %v1324_v50 = vpop.eup %1323  ;;  %v1660_v53 = vmul.f32 %v219_v18, %v143_v63 }
  0x5b   :  { %v276_v35 = vld [vmem:[#allocation8 + $0xd0] sm:$0xff]  ;;  %v147_v26 = vld [vmem:[#allocation3 + $0x188] sm:$0xff]  ;;  %v222_v27 = vld [vmem:[#allocation6 + $0x180] sm:$0xff]  ;;  %v372_v45 = vmul.f32 %v220_v21, %v144_v0  ;;  %v1662_v46 = vmul.f32 %v221_v24, %v145_v12  ;;  %v1326_v44 = vpop.eup %1325  ;;  %v459_v55 = vmul.f32 0.6931472, %v1324_v50  ;;  %1341 = vlog2.f32 %v366_v9 }
  0x5c   :  { %v223_v40 = vld [vmem:[#allocation6 + $0x188] sm:$0xff]  ;;  %v1130_v49 = vadd.f32 %v1129_v30, %v574_v7  ;;  %v148_v32 = vld [vmem:[#allocation3 + $0x190] sm:$0xff]  ;;  %v149_v51 = vld [vmem:[#allocation3 + $0x198] sm:$0xff]  ;;  %v580_v1 = vmul.f32 %v455_v48, %v276_v35  ;;  %v1328_v33 = vpop.eup %1327  ;;  %v374_v14 = vmul.f32 %v222_v27, %v146_v34  ;;  %v409_v0 = vmul.f32 0.6931472, %v1316_v62 }
  0x5d   :  { %v278_v52 = vld [vmem:[#allocation8 + $0xe0] sm:$0xff]  ;;  %v224_v57 = vld [vmem:[#allocation6 + $0x190] sm:$0xff]  ;;  %v225_v60 = vld [vmem:[#allocation6 + $0x198] sm:$0xff]  ;;  %v1665_v63 = vmul.f32 %v223_v40, %v147_v26  ;;  %v1330_v12 = vpop.eup %1329  ;;  %1343 = vlog2.f32 %v1625_v47  ;;  %v463_v21 = vmul.f32 0.6931472, %v1328_v33 }
  0x5e   :  { %v150_v56 = vld [vmem:[#allocation3 + $0x1a0] sm:$0xff]  ;;  %v1131_v2 = vadd.f32 %v1130_v49, %v576_v29  ;;  %v152_v7 = vld [vmem:[#allocation3 + $0x1b0] sm:$0xff]  ;;  %v251_v10 = vld [vmem:[#allocation8 + $0x8] sm:$0xff]  ;;  %v582_v39 = vmul.f32 %v459_v55, %v278_v52  ;;  %v1332_v20 = vpop.eup %1331  ;;  %v376_v30 = vmul.f32 %v224_v57, %v148_v32  ;;  %v1668_v31 = vmul.f32 %v225_v60, %v149_v51 }
  0x5f   :  { %v280_v11 = vld [vmem:[#allocation8 + $0xf0] sm:$0xff]  ;;  %v226_v15 = vld [vmem:[#allocation6 + $0x1a0] sm:$0xff]  ;;  %v253_v18 = vld [vmem:[#allocation8 + $0x18] sm:$0xff]  ;;  %v413_v35 = vmul.f32 0.6931472, %v1320_v17  ;;  %1345 = vlog2.f32 %v368_v36  ;;  %v555_v27 = vmul.f32 %v405_v25, %v251_v10  ;;  %v1334_v49 = vpop.eup %1333 }
  0x60   :  { %v228_v8 = vld [vmem:[#allocation6 + $0x1b0] sm:$0xff]  ;;  %v1132_v24 = vadd.f32 %v1131_v2, %v578_v37  ;;  %v282_v29 = vld [vmem:[#allocation8 + $0x100] sm:$0xff]  ;;  %v255_v62 = vld [vmem:[#allocation8 + $0x28] sm:$0xff]  ;;  %v467_v9 = vmul.f32 0.6931472, %v1332_v20  ;;  %v584_v40 = vmul.f32 %v463_v21, %v280_v11  ;;  %v378_v47 = vmul.f32 %v226_v15, %v150_v56 }
  0x61   :  { %v154_v34 = vld [vmem:[#allocation3 + $0x1c0] sm:$0xff]  ;;  %v284_v50 = vld [vmem:[#allocation8 + $0x110] sm:$0xff]  ;;  %v380_v33 = vmul.f32 %v228_v8, %v152_v7  ;;  %1347 = vlog2.f32 %v370_v43  ;;  %v557_v37 = vmul.f32 %v409_v0, %v253_v18  ;;  %v471_v32 = vmul.f32 0.6931472, %v1334_v49  ;;  %v1336_v51 = vpop.eup %1335  ;;  %v257_v2 = vld [vmem:[#allocation8 + $0x38] sm:$0xff] }
  0x62   :  { %v230_v26 = vld [vmem:[#allocation6 + $0x1c0] sm:$0xff]  ;;  %v1133_v48 = vadd.f32 %v1132_v24, %v580_v1  ;;  %v156_v52 = vld [vmem:[#allocation3 + $0x1d0] sm:$0xff]  ;;  %1349 = vlog2.f32 %v1627_v54  ;;  %v586_v17 = vmul.f32 %v467_v9, %v282_v29  ;;  %v417_v25 = vmul.f32 0.6931472, %v1326_v44  ;;  %v1338_v11 = vpop.eup %1337  ;;  %v259_v24 = vld [vmem:[#allocation8 + $0x48] sm:$0xff] }
  0x63   :  { %v232_v55 = vld [vmem:[#allocation6 + $0x1d0] sm:$0xff]  ;;  %v286_v57 = vld [vmem:[#allocation8 + $0x120] sm:$0xff]  ;;  %v1671_v60 = vmul.f32 %v230_v26, %v154_v34  ;;  %1351 = vlog2.f32 %v372_v45  ;;  %v559_v1 = vmul.f32 %v413_v35, %v255_v62  ;;  %v475_v10 = vmul.f32 0.6931472, %v1336_v51  ;;  %v1340_v45 = vpop.eup %1339  ;;  %vm1042_vm3 = vmand %vm884_vm2, %vm886_vm1 }
  0x64   :  { %v1134_v36 = vadd.f32 %v1133_v48, %v582_v39  ;;  %v588_v56 = vmul.f32 %v471_v32, %v284_v50  ;;  %v1044_v43 = vsel %vm886_vm1, %v555_v27, 0.0  ;;  %v158_v0 = vld [vmem:[#allocation3 + $0x1e0] sm:$0xff]  ;;  %v160_v54 = vld [vmem:[#allocation3 + $0x1f0] sm:$0xff]  ;;  %v1675_v8 = vmul.f32 %v232_v55, %v156_v52 }
  0x65   :  { %v288_v15 = vld [vmem:[#allocation8 + $0x130] sm:$0xff]  ;;  %v421_v18 = vmul.f32 0.6931472, %v1330_v12  ;;  %1353 = vlog2.f32 %v374_v14  ;;  %v1046_v44 = vsel %vm886_vm1, %v557_v37, 0.0  ;;  %v234_v21 = vld [vmem:[#allocation6 + $0x1e0] sm:$0xff]  ;;  %v590_v29 = vmul.f32 %v475_v10, %v286_v57  ;;  %v1342_v34 = vpop.eup %1341 }
  0x66   :  { %v1135_v7 = vadd.f32 %v1134_v36, %v584_v40  ;;  %v236_v39 = vld [vmem:[#allocation6 + $0x1f0] sm:$0xff]  ;;  %1355 = vlog2.f32 %v1629_v61  ;;  %v479_v20 = vmul.f32 0.6931472, %v1338_v11  ;;  %v290_v26 = vld [vmem:[#allocation8 + $0x140] sm:$0xff]  ;;  %v561_v62 = vmul.f32 %v417_v25, %v257_v2 }
  0x67   :  { %1357 = vlog2.f32 %v376_v30  ;;  %v1048_v12 = vsel %vm886_vm1, %v559_v1, 0.0  ;;  %v1159_v14 = vsel %vm96_vm0, %v1044_v43, 0.0  ;;  %v1344_v9 = vpop.eup %1343  ;;  %v483_v27 = vmul.f32 0.6931472, %v1342_v34  ;;  %v162_v61 = vld [vmem:[#allocation3 + $0x200] sm:$0xff]  ;;  %v292_v37 = vld [vmem:[#allocation8 + $0x150] sm:$0xff] }
  0x68   :  { %v1136_v35 = vadd.f32 %v1135_v7, %v586_v17  ;;  %v592_v40 = vmul.f32 %v479_v20, %v288_v15  ;;  %v1160_v49 = vsel %vm96_vm0, %v1046_v44, 0.0  ;;  %v386_v52 = vmul.f32 %v234_v21, %v158_v0  ;;  %v164_v32 = vld [vmem:[#allocation3 + $0x210] sm:$0xff]  ;;  %v238_v17 = vld [vmem:[#allocation6 + $0x200] sm:$0xff] }
  0x69   :  { %v1346_v50 = vpop.eup %1345  ;;  %v1684_v55 = vmul.f32 %v236_v39, %v160_v54  ;;  %1359 = vlog2.f32 %v378_v47  ;;  %v563_v30 = vmul.f32 %v421_v18, %v259_v24  ;;  %v240_v36 = vld [vmem:[#allocation6 + $0x210] sm:$0xff]  ;;  %v594_v57 = vmul.f32 %v483_v27, %v290_v26  ;;  %v294_v2 = vld [vmem:[#allocation8 + $0x160] sm:$0xff] }
  0x6a   :  { %v1137_v48 = vadd.f32 %v1136_v35, %v588_v56  ;;  %1361 = vlog2.f32 %v1631_v4  ;;  %v487_v51 = vmul.f32 0.6931472, %v1346_v50  ;;  %v1050_v10 = vsel %vm886_vm1, %v561_v62, 0.0  ;;  %v166_v4 = vld [vmem:[#allocation3 + $0x220] sm:$0xff]  ;;  %v296_v15 = vld [vmem:[#allocation8 + $0x170] sm:$0xff] }
  0x6b   :  { %v1348_v1 = vpop.eup %1347  ;;  %1363 = vlog2.f32 %v380_v33  ;;  %v1161_v56 = vadd.f32 %v1160_v49, %v1159_v14  ;;  %v1162_v43 = vsel %vm96_vm0, %v1048_v12, 0.0  ;;  %v390_v18 = vmul.f32 %v238_v17, %v162_v61  ;;  %v168_v21 = vld [vmem:[#allocation3 + $0x230] sm:$0xff]  ;;  %v242_v39 = vld [vmem:[#allocation6 + $0x220] sm:$0xff] }
  0x6c   :  { %v1138_v25 = vadd.f32 %v1137_v48, %v590_v29  ;;  %v1350_v7 = vpop.eup %1349  ;;  %1365 = vlog2.f32 %v1633_v6  ;;  %v491_v47 = vmul.f32 0.6931472, %v1348_v1  ;;  %v596_v11 = vmul.f32 %v487_v51, %v292_v37  ;;  %v244_v24 = vld [vmem:[#allocation6 + $0x230] sm:$0xff]  ;;  %v170_v34 = vld [vmem:[#allocation3 + $0x240] sm:$0xff] }
  0x6d   :  { %v1352_v54 = vpop.eup %1351  ;;  %v1691_v44 = vmul.f32 %v240_v36, %v164_v32  ;;  %1367 = vlog2.f32 %v1671_v60  ;;  %v1052_v33 = vsel %vm886_vm1, %v563_v30, 0.0  ;;  %v246_v26 = vld [vmem:[#allocation6 + $0x240] sm:$0xff]  ;;  %v425_v12 = vmul.f32 0.6931472, %v1340_v45  ;;  %v300_v61 = vld [vmem:[#allocation8 + $0x190] sm:$0xff]  ;;  %v263_v36 = vld [vmem:[#allocation8 + $0x68] sm:$0xff] }
  0x6e   :  { %v1139_v0 = vadd.f32 %v1138_v25, %v592_v40  ;;  %1369 = vlog2.f32 %v1635_v13  ;;  %v495_v6 = vmul.f32 0.6931472, %v1352_v54  ;;  %v598_v20 = vmul.f32 %v491_v47, %v294_v2  ;;  %v298_v62 = vld [vmem:[#allocation8 + $0x180] sm:$0xff]  ;;  %v261_v40 = vld [vmem:[#allocation8 + $0x58] sm:$0xff]  ;;  %v172_v17 = vld [vmem:[#allocation3 + $0x250] sm:$0xff] }
  0x6f   :  { %v1354_v35 = vpop.eup %1353  ;;  %1371 = vlog2.f32 %v1675_v8  ;;  %v1163_v14 = vadd.f32 %v1162_v43, %v1161_v56  ;;  %v1164_v60 = vsel %vm96_vm0, %v1050_v10, 0.0  ;;  %v394_v37 = vmul.f32 %v242_v39, %v166_v4  ;;  %v248_v45 = vld [vmem:[#allocation6 + $0x250] sm:$0xff]  ;;  %v302_v2 = vld [vmem:[#allocation8 + $0x1a0] sm:$0xff]  ;;  %v265_v39 = vld [vmem:[#allocation8 + $0x78] sm:$0xff] }
  0x70   :  { %v1140_v29 = vadd.f32 %v1139_v0, %v594_v57  ;;  %v1356_v27 = vpop.eup %1355  ;;  %1373 = vlog2.f32 %v1637_v22  ;;  %v499_v48 = vmul.f32 0.6931472, %v1354_v35  ;;  %v600_v49 = vmul.f32 %v495_v6, %v296_v15  ;;  %v304_v0 = vld [vmem:[#allocation8 + $0x1b0] sm:$0xff] }
  0x71   :  { %v1358_v50 = vpop.eup %1357  ;;  %v396_v30 = vmul.f32 %v244_v24, %v168_v21  ;;  %v429_v32 = vmul.f32 0.6931472, %v1344_v9  ;;  %1375 = vlog2.f32 %v386_v52  ;;  %v1700_v8 = vmul.f32 %v246_v26, %v170_v34  ;;  %v267_v26 = vld [vmem:[#allocation8 + $0x88] sm:$0xff] }
  0x72   :  { %v1141_v13 = vadd.f32 %v1140_v29, %v596_v11  ;;  %v503_v51 = vmul.f32 0.6931472, %v1358_v50  ;;  %v602_v57 = vmul.f32 %v499_v48, %v298_v62  ;;  %1377 = vlog2.f32 %v1684_v55 }
  0x73   :  { %v1360_v1 = vpop.eup %1359  ;;  %v565_v22 = vmul.f32 %v425_v12, %v261_v40  ;;  %v1165_v10 = vadd.f32 %v1164_v60, %v1163_v14  ;;  %v1166_v56 = vsel %vm96_vm0, %v1052_v33, 0.0  ;;  %1379 = vlog2.f32 %v1639_v23  ;;  %v308_v60 = vld [vmem:[#allocation8 + $0x1d0] sm:$0xff] }
  0x74   :  { %v1142_v25 = vadd.f32 %v1141_v13, %v598_v20  ;;  %v1362_v43 = vpop.eup %1361  ;;  %v507_v9 = vmul.f32 0.6931472, %v1360_v1  ;;  %v604_v52 = vmul.f32 %v503_v51, %v300_v61  ;;  %v400_v54 = vmul.f32 %v248_v45, %v172_v17  ;;  %v306_v20 = vld [vmem:[#allocation8 + $0x1c0] sm:$0xff] }
  0x75   :  { %v1364_v11 = vpop.eup %1363  ;;  %v433_v4 = vmul.f32 0.6931472, %v1350_v7  ;;  %1381 = vlog2.f32 %v390_v18  ;;  %v567_v15 = vmul.f32 %v429_v32, %v263_v36  ;;  %v437_v29 = vmul.f32 0.6931472, %v1356_v27  ;;  %v269_v7 = vld [vmem:[#allocation8 + $0x98] sm:$0xff]  ;;  %v310_v17 = vld [vmem:[#allocation8 + $0x1e0] sm:$0xff] }
  0x76   :  { %v1143_v47 = vadd.f32 %v1142_v25, %v600_v49  ;;  %v1366_v21 = vpop.eup %1365  ;;  %1383 = vlog2.f32 %v1642_v41  ;;  %v511_v55 = vmul.f32 0.6931472, %v1364_v11  ;;  %v606_v24 = vmul.f32 %v507_v9, %v302_v2  ;;  %v271_v49 = vld [vmem:[#allocation8 + $0xa8] sm:$0xff]  ;;  %v314_v11 = vld [vmem:[#allocation8 + $0x200] sm:$0xff] }
  0x77   :  { %v1368_v33 = vpop.eup %1367  ;;  %v441_v23 = vmul.f32 0.6931472, %v1362_v43  ;;  %1385 = vlog2.f32 %v1691_v44  ;;  %v1707_v35 = vadd.f32 %v1166_v56, %v1165_v10  ;;  %v1054_v12 = vsel %vm886_vm1, %v565_v22, 0.0  ;;  %v312_v22 = vld [vmem:[#allocation8 + $0x1f0] sm:$0xff]  ;;  %v275_v9 = vld [vmem:[#allocation8 + $0xc8] sm:$0xff] }
  0x78   :  { %v1144_v6 = vadd.f32 %v1143_v47, %v602_v57  ;;  %v1370_v34 = vpop.eup %1369  ;;  %v515_v18 = vmul.f32 0.6931472, %v1368_v33  ;;  %v608_v62 = vmul.f32 %v511_v55, %v304_v0  ;;  %v445_v40 = vmul.f32 0.6931472, %v1366_v21  ;;  %v273_v57 = vld [vmem:[#allocation8 + $0xb8] sm:$0xff] }
  0x79   :  { %v1372_v14 = vpop.eup %1371  ;;  %1387 = vlog2.f32 %v394_v37  ;;  %v569_v48 = vmul.f32 %v433_v4, %v265_v39  ;;  %v1056_v27 = vsel %vm886_vm1, %v567_v15, 0.0  ;;  %v449_v45 = vmul.f32 0.6931472, %v1370_v34 }
  0x7a   :  { %v1145_v41 = vadd.f32 %v1144_v6, %v604_v52  ;;  %v1374_v44 = vpop.eup %1373  ;;  %1389 = vlog2.f32 %v1644_v42  ;;  %v519_v13 = vmul.f32 0.6931472, %v1372_v14  ;;  %v610_v50 = vmul.f32 %v515_v18, %v306_v20 }
  0x7b   :  { %v1376_v32 = vpop.eup %1375  ;;  %1391 = vlog2.f32 %v396_v30  ;;  %v571_v36 = vmul.f32 %v437_v29, %v267_v26  ;;  %v573_v51 = vmul.f32 %v441_v23, %v269_v7  ;;  %v453_v10 = vmul.f32 0.6931472, %v1374_v44  ;;  %v277_v29 = vld [vmem:[#allocation8 + $0xd8] sm:$0xff] }
  0x7c   :  { %v1146_v61 = vadd.f32 %v1145_v41, %v606_v24  ;;  %1393 = vlog2.f32 %v1647_v58  ;;  %v523_v37 = vmul.f32 0.6931472, %v1376_v32  ;;  %v612_v25 = vmul.f32 %v519_v13, %v308_v60  ;;  %v1378_v2 = vpop.eup %1377  ;;  %v316_v24 = vld [vmem:[#allocation8 + $0x210] sm:$0xff] }
  0x7d   :  { %1395 = vlog2.f32 %v1700_v8  ;;  %v575_v42 = vmul.f32 %v445_v40, %v271_v49  ;;  %v1058_v56 = vsel %vm886_vm1, %v569_v48, 0.0  ;;  %v1380_v43 = vpop.eup %1379  ;;  %v527_v30 = vmul.f32 0.6931472, %v1378_v2  ;;  %v279_v40 = vld [vmem:[#allocation8 + $0xe8] sm:$0xff]  ;;  %v281_v2 = vld [vmem:[#allocation8 + $0xf8] sm:$0xff] }
  0x7e   :  { %v1147_v1 = vadd.f32 %v1146_v61, %v608_v62  ;;  %1397 = vlog2.f32 %v1649_v59  ;;  %v614_v52 = vmul.f32 %v523_v37, %v310_v17  ;;  %v577_v0 = vmul.f32 %v449_v45, %v273_v57  ;;  %v322_v57 = vld [vmem:[#allocation8 + $0x240] sm:$0xff] }
  0x7f   :  { %v1382_v58 = vpop.eup %1381  ;;  %1399 = vlog2.f32 %v400_v54  ;;  %v1060_v4 = vsel %vm886_vm1, %v571_v36, 0.0  ;;  %v1062_v8 = vsel %vm886_vm1, %v573_v51, 0.0  ;;  %v616_v39 = vmul.f32 %v527_v30, %v312_v22 }
  0x80   :  { %v1148_v47 = vadd.f32 %v1147_v1, %v610_v50  ;;  %v1384_v15 = vpop.eup %1383  ;;  %1401 = vlog2.f32 %v1651_v3  ;;  %v531_v21 = vmul.f32 0.6931472, %v1382_v58  ;;  %v457_v6 = vmul.f32 0.6931472, %v1380_v43  ;;  %v318_v3 = vld [vmem:[#allocation8 + $0x220] sm:$0xff]  ;;  %v320_v50 = vld [vmem:[#allocation8 + $0x230] sm:$0xff] }
  0x81   :  { %v1386_v59 = vpop.eup %1385  ;;  %v579_v33 = vmul.f32 %v453_v10, %v275_v9  ;;  %v1064_v54 = vsel %vm886_vm1, %v575_v42, 0.0  ;;  %v1168_v20 = vsel %vm96_vm0, %v1054_v12, 0.0  ;;  %v461_v62 = vmul.f32 0.6931472, %v1384_v15  ;;  %v324_v9 = vld [vmem:[#allocation8 + $0x250] sm:$0xff]  ;;  %v151_v58 = vld [vmem:[#allocation3 + $0x1a8] sm:$0xff] }
  0x82   :  { %v1149_v55 = vadd.f32 %v1148_v47, %v612_v25  ;;  %v535_v23 = vmul.f32 0.6931472, %v1386_v59  ;;  %v618_v34 = vmul.f32 %v531_v21, %v314_v11  ;;  %v1169_v7 = vadd.f32 %v1168_v20, %v1707_v35  ;;  %v227_v11 = vld [vmem:[#allocation6 + $0x1a8] sm:$0xff] }
  0x83   :  { %v1388_v18 = vpop.eup %1387  ;;  %1403 = vlog2.f32 %v1653_v16  ;;  %v1066_v41 = vsel %vm886_vm1, %v577_v0, 0.0  ;;  %v1170_v14 = vsel %vm96_vm0, %v1056_v27, 0.0  ;;  %v581_v35 = vmul.f32 %v457_v6, %v277_v29  ;;  %v229_v6 = vld [vmem:[#allocation6 + $0x1b8] sm:$0xff] }
  0x84   :  { %v1150_v26 = vadd.f32 %v1149_v55, %v614_v52  ;;  %v1390_v60 = vpop.eup %1389  ;;  %v539_v48 = vmul.f32 0.6931472, %v1388_v18  ;;  %v620_v12 = vmul.f32 %v535_v23, %v316_v24  ;;  %v1171_v49 = vadd.f32 %v1170_v14, %v1169_v7 }
  0x85   :  { %v1392_v13 = vpop.eup %1391  ;;  %1405 = vlog2.f32 %v1655_v28  ;;  %v1068_v61 = vsel %vm886_vm1, %v579_v33, 0.0  ;;  %v1172_v16 = vsel %vm96_vm0, %v1058_v56, 0.0  ;;  %v465_v37 = vmul.f32 0.6931472, %v1390_v60 }
  0x86   :  { %v1151_v44 = vadd.f32 %v1150_v26, %v616_v39  ;;  %v1394_v32 = vpop.eup %1393  ;;  %v543_v17 = vmul.f32 0.6931472, %v1392_v13  ;;  %v622_v45 = vmul.f32 %v539_v48, %v318_v3  ;;  %v1173_v36 = vadd.f32 %v1172_v16, %v1171_v49  ;;  %v283_v39 = vld [vmem:[#allocation8 + $0x108] sm:$0xff]  ;;  %v233_v49 = vld [vmem:[#allocation6 + $0x1d8] sm:$0xff] }
  0x87   :  { %v1396_v51 = vpop.eup %1395  ;;  %1407 = vlog2.f32 %v1657_v38  ;;  %v583_v25 = vmul.f32 %v461_v62, %v279_v40  ;;  %v1174_v28 = vsel %vm96_vm0, %v1060_v4, 0.0  ;;  %v469_v30 = vmul.f32 0.6931472, %v1394_v32  ;;  %v155_v3 = vld [vmem:[#allocation3 + $0x1c8] sm:$0xff]  ;;  %v289_v32 = vld [vmem:[#allocation8 + $0x138] sm:$0xff] }
  0x88   :  { %v1152_v27 = vadd.f32 %v1151_v44, %v618_v34  ;;  %v1398_v1 = vpop.eup %1397  ;;  %v547_v22 = vmul.f32 0.6931472, %v1396_v51  ;;  %v624_v10 = vmul.f32 %v543_v17, %v320_v50  ;;  %v1175_v56 = vadd.f32 %v1174_v28, %v1173_v36  ;;  %v285_v34 = vld [vmem:[#allocation8 + $0x118] sm:$0xff]  ;;  %v287_v62 = vld [vmem:[#allocation8 + $0x128] sm:$0xff] }
  0x89   :  { %v1400_v43 = vpop.eup %1399  ;;  %1409 = vlog2.f32 %v1660_v53  ;;  %v1070_v52 = vsel %vm886_vm1, %v581_v35, 0.0  ;;  %v1176_v47 = vsel %vm96_vm0, %v1062_v8, 0.0  ;;  %v473_v55 = vmul.f32 0.6931472, %v1398_v1  ;;  %v153_v53 = vld [vmem:[#allocation3 + $0x1b8] sm:$0xff]  ;;  %v235_v36 = vld [vmem:[#allocation6 + $0x1e8] sm:$0xff] }
  0x8a   :  { %v1153_v42 = vadd.f32 %v1152_v27, %v620_v12  ;;  %v1402_v38 = vpop.eup %1401  ;;  %v551_v0 = vmul.f32 0.6931472, %v1400_v43  ;;  %v626_v4 = vmul.f32 %v547_v22, %v322_v57  ;;  %v1177_v21 = vadd.f32 %v1176_v47, %v1175_v56  ;;  %v157_v44 = vld [vmem:[#allocation3 + $0x1d8] sm:$0xff]  ;;  %v159_v27 = vld [vmem:[#allocation3 + $0x1e8] sm:$0xff] }
  0x8b   :  { %1411 = vlog2.f32 %v1662_v46  ;;  %v585_v59 = vmul.f32 %v465_v37, %v281_v2  ;;  %v1178_v24 = vsel %vm96_vm0, %v1064_v54, 0.0  ;;  %v1180_v8 = vsel %vm96_vm0, %v1066_v41, 0.0  ;;  %v231_v46 = vld [vmem:[#allocation6 + $0x1c8] sm:$0xff]  ;;  %v293_v47 = vld [vmem:[#allocation8 + $0x158] sm:$0xff] }
  0x8c   :  { %v1154_v15 = vadd.f32 %v1153_v42, %v622_v45  ;;  %v628_v33 = vmul.f32 %v551_v0, %v324_v9  ;;  %v1179_v29 = vadd.f32 %v1178_v24, %v1177_v21  ;;  %v379_v26 = vmul.f32 %v227_v11, %v151_v58  ;;  %v291_v1 = vld [vmem:[#allocation8 + $0x148] sm:$0xff]  ;;  %v237_v42 = vld [vmem:[#allocation6 + $0x1f8] sm:$0xff] }
  0x8d   :  { %v1404_v23 = vpop.eup %1403  ;;  %v477_v7 = vmul.f32 0.6931472, %v1402_v38  ;;  %1413 = vlog2.f32 %v1665_v63  ;;  %v1182_v18 = vsel %vm96_vm0, %v1068_v61, 0.0  ;;  %v587_v14 = vmul.f32 %v469_v30, %v283_v39  ;;  %v163_v0 = vld [vmem:[#allocation3 + $0x208] sm:$0xff] }
  0x8e   :  { %v1155_v20 = vadd.f32 %v1154_v15, %v624_v10  ;;  %v1072_v54 = vsel %vm886_vm1, %v583_v25, 0.0  ;;  %v1181_v40 = vadd.f32 %v1180_v8, %v1179_v29  ;;  %v381_v12 = vmul.f32 %v229_v6, %v153_v53  ;;  %v161_v10 = vld [vmem:[#allocation3 + $0x1f8] sm:$0xff] }
  0x8f   :  { %v1406_v48 = vpop.eup %1405  ;;  %1415 = vlog2.f32 %v1668_v31  ;;  %v1117_v41 = vsel %vm884_vm2, %v628_v33, 0.0  ;;  %v1184_v63 = vsel %vm96_vm0, %v1070_v52, 0.0  ;;  %v481_v13 = vmul.f32 0.6931472, %v1404_v23  ;;  %v165_v6 = vld [vmem:[#allocation3 + $0x218] sm:$0xff] }
  0x90   :  { %v1156_v60 = vadd.f32 %v1155_v20, %v626_v4  ;;  %v589_v50 = vmul.f32 %v473_v55, %v285_v34  ;;  %v1074_v35 = vsel %vm886_vm1, %v585_v59, 0.0  ;;  %v1183_v61 = vadd.f32 %v1182_v18, %v1181_v40  ;;  %v239_v4 = vld [vmem:[#allocation6 + $0x208] sm:$0xff]  ;;  %v241_v33 = vld [vmem:[#allocation6 + $0x218] sm:$0xff] }
  0x91   :  { %v1408_v16 = vpop.eup %1407  ;;  %v383_v17 = vmul.f32 %v231_v46, %v155_v3  ;;  %1417 = vlog2.f32 %v379_v26  ;;  %v591_v45 = vmul.f32 %v477_v7, %v287_v62  ;;  %v1186_v31 = vsel %vm96_vm0, %v1072_v54, 0.0  ;;  %v295_v59 = vld [vmem:[#allocation8 + $0x168] sm:$0xff]  ;;  %v297_v26 = vld [vmem:[#allocation8 + $0x178] sm:$0xff] }
  0x92   :  { %v485_v51 = vmul.f32 0.6931472, %v1406_v48  ;;  %v1076_v57 = vsel %vm886_vm1, %v587_v14, 0.0  ;;  %v1759_v37 = vadd.f32 %v1156_v60, %v1117_v41  ;;  %v1185_v25 = vadd.f32 %v1184_v63, %v1183_v61  ;;  %v167_v3 = vld [vmem:[#allocation3 + $0x228] sm:$0xff]  ;;  %v169_v63 = vld [vmem:[#allocation3 + $0x238] sm:$0xff] }
  0x93   :  { %v1410_v28 = vpop.eup %1409  ;;  %v385_v2 = vmul.f32 %v233_v49, %v157_v44  ;;  %1419 = vlog2.f32 %v381_v12  ;;  %v1188_v22 = vsel %vm96_vm0, %v1074_v35, 0.0  ;;  %v489_v56 = vmul.f32 0.6931472, %v1408_v16  ;;  %v243_v46 = vld [vmem:[#allocation6 + $0x228] sm:$0xff]  ;;  %v245_v44 = vld [vmem:[#allocation6 + $0x238] sm:$0xff] }
  0x94   :  { %v593_v43 = vmul.f32 %v481_v13, %v289_v32  ;;  %v1078_v9 = vsel %vm886_vm1, %v589_v50, 0.0  ;;  %v1187_v30 = vadd.f32 %v1186_v31, %v1185_v25  ;;  %v387_v38 = vmul.f32 %v235_v36, %v159_v27  ;;  %v299_v48 = vld [vmem:[#allocation8 + $0x188] sm:$0xff]  ;;  %v301_v16 = vld [vmem:[#allocation8 + $0x198] sm:$0xff] }
  0x95   :  { %v1412_v52 = vpop.eup %1411  ;;  %1421 = vlog2.f32 %v383_v17  ;;  %v1080_v58 = vsel %vm886_vm1, %v591_v45, 0.0  ;;  %v1190_v11 = vsel %vm96_vm0, %v1076_v57, 0.0  ;;  %v493_v15 = vmul.f32 0.6931472, %v1410_v28  ;;  %v171_v45 = vld [vmem:[#allocation3 + $0x248] sm:$0xff] }
  0x96   :  { %v595_v21 = vmul.f32 %v485_v51, %v291_v1  ;;  %v1189_v39 = vadd.f32 %v1188_v22, %v1187_v30  ;;  %v389_v24 = vmul.f32 %v237_v42, %v161_v10  ;;  %1423 = vlog2.f32 %v385_v2  ;;  %v247_v31 = vld [vmem:[#allocation6 + $0x248] sm:$0xff]  ;;  %v173_v22 = vld [vmem:[#allocation3 + $0x258] sm:$0xff] }
  0x97   :  { %v1414_v55 = vpop.eup %1413  ;;  %v1192_v53 = vsel %vm96_vm0, %v1078_v9, 0.0  ;;  %v497_v20 = vmul.f32 0.6931472, %v1412_v52  ;;  %v597_v29 = vmul.f32 %v489_v56, %v293_v47  ;;  %v1082_v8 = vsel %vm886_vm1, %v593_v43, 0.0  ;;  %v303_v28 = vld [vmem:[#allocation8 + $0x1a8] sm:$0xff]  ;;  %v249_v10 = vld [vmem:[#allocation6 + $0x258] sm:$0xff] }
  0x98   :  { %v1191_v23 = vadd.f32 %v1190_v11, %v1189_v39  ;;  %v391_v7 = vmul.f32 %v239_v4, %v163_v0  ;;  %1425 = vlog2.f32 %v387_v38  ;;  %v1194_v18 = vsel %vm96_vm0, %v1080_v58, 0.0  ;;  %v305_v52 = vld [vmem:[#allocation8 + $0x1b8] sm:$0xff] }
  0x99   :  { %v1416_v34 = vpop.eup %1415  ;;  %v501_v62 = vmul.f32 0.6931472, %v1414_v55  ;;  %v599_v14 = vmul.f32 %v493_v15, %v295_v59  ;;  %v1084_v54 = vsel %vm886_vm1, %v595_v21, 0.0  ;;  %v393_v12 = vmul.f32 %v241_v33, %v165_v6  ;;  %v307_v21 = vld [vmem:[#allocation8 + $0x1c8] sm:$0xff] }
  0x9a   :  { %v1193_v60 = vadd.f32 %v1192_v53, %v1191_v23  ;;  %1427 = vlog2.f32 %v389_v24  ;;  %v1196_v41 = vsel %vm96_vm0, %v1082_v8, 0.0  ;;  %v505_v49 = vmul.f32 0.6931472, %v1416_v34 }
  0x9b   :  { %v1418_v40 = vpop.eup %1417  ;;  %v601_v13 = vmul.f32 %v497_v20, %v297_v26  ;;  %v1086_v50 = vsel %vm886_vm1, %v597_v29, 0.0  ;;  %v395_v32 = vmul.f32 %v243_v46, %v167_v3  ;;  %1429 = vlog2.f32 %v391_v7  ;;  %v309_v20 = vld [vmem:[#allocation8 + $0x1d8] sm:$0xff] }
  0x9c   :  { %v1195_v35 = vadd.f32 %v1194_v18, %v1193_v60  ;;  %v1198_v17 = vsel %vm96_vm0, %v1084_v54, 0.0  ;;  %v509_v27 = vmul.f32 0.6931472, %v1418_v40  ;;  %v603_v36 = vmul.f32 %v501_v62, %v299_v48  ;;  %v311_v18 = vld [vmem:[#allocation8 + $0x1e8] sm:$0xff]  ;;  %v313_v40 = vld [vmem:[#allocation8 + $0x1f8] sm:$0xff] }
  0x9d   :  { %v1420_v61 = vpop.eup %1419  ;;  %v1088_v51 = vsel %vm886_vm1, %v599_v14, 0.0  ;;  %v397_v1 = vmul.f32 %v245_v44, %v169_v63  ;;  %1431 = vlog2.f32 %v393_v12  ;;  %v1200_v2 = vsel %vm96_vm0, %v1086_v50, 0.0 }
  0x9e   :  { %v1197_v57 = vadd.f32 %v1196_v41, %v1195_v35  ;;  %v513_v42 = vmul.f32 0.6931472, %v1420_v61  ;;  %v605_v56 = vmul.f32 %v505_v49, %v301_v16  ;;  %v1090_v43 = vsel %vm886_vm1, %v601_v13, 0.0  ;;  %v315_v13 = vld [vmem:[#allocation8 + $0x208] sm:$0xff] }
  0x9f   :  { %v1422_v25 = vpop.eup %1421  ;;  %v399_v47 = vmul.f32 %v247_v31, %v171_v45  ;;  %1433 = vlog2.f32 %v395_v32  ;;  %v1202_v38 = vsel %vm96_vm0, %v1088_v51, 0.0  ;;  %v607_v11 = vmul.f32 %v509_v27, %v303_v28  ;;  %v317_v45 = vld [vmem:[#allocation8 + $0x218] sm:$0xff]  ;;  %v319_v28 = vld [vmem:[#allocation8 + $0x228] sm:$0xff] }
  0xa0   :  { %v1199_v9 = vadd.f32 %v1198_v17, %v1197_v57  ;;  %v1424_v30 = vpop.eup %1423  ;;  %v517_v58 = vmul.f32 0.6931472, %v1422_v25  ;;  %v1092_v0 = vsel %vm886_vm1, %v603_v36, 0.0  ;;  %v401_v39 = vmul.f32 %v249_v10, %v173_v22 }
  0xa1   :  { %1435 = vlog2.f32 %v397_v1  ;;  %v1204_v55 = vsel %vm96_vm0, %v1090_v43, 0.0  ;;  %v521_v59 = vmul.f32 0.6931472, %v1424_v30  ;;  %v609_v24 = vmul.f32 %v513_v42, %v305_v52  ;;  %v321_v43 = vld [vmem:[#allocation8 + $0x238] sm:$0xff] }
  0xa2   :  { %v1201_v4 = vadd.f32 %v1200_v2, %v1199_v9  ;;  %v1426_v15 = vpop.eup %1425  ;;  %v1094_v53 = vsel %vm886_vm1, %v605_v56, 0.0  ;;  %1437 = vlog2.f32 %v399_v47  ;;  %v1206_v29 = vsel %vm96_vm0, %v1092_v0, 0.0 }
  0xa3   :  { %v525_v8 = vmul.f32 0.6931472, %v1426_v15  ;;  %v611_v23 = vmul.f32 %v517_v58, %v307_v21  ;;  %v1096_v34 = vsel %vm886_vm1, %v607_v11, 0.0  ;;  %1439 = vlog2.f32 %v401_v39  ;;  %v323_v58 = vld [vmem:[#allocation8 + $0x248] sm:$0xff]  ;;  %v325_v39 = vld [vmem:[#allocation8 + $0x258] sm:$0xff] }
  0xa4   :  { %v1203_v6 = vadd.f32 %v1202_v38, %v1201_v4  ;;  %v1428_v33 = vpop.eup %1427  ;;  %v1208_v3 = vsel %vm96_vm0, %v1094_v53, 0.0  ;;  %v613_v62 = vmul.f32 %v521_v59, %v309_v20  ;;  %v1098_v14 = vsel %vm886_vm1, %v609_v24, 0.0 }
  0xa5   :  { %v1430_v7 = vpop.eup %1429  ;;  %v529_v46 = vmul.f32 0.6931472, %v1428_v33  ;;  %v1210_v48 = vsel %vm96_vm0, %v1096_v34, 0.0  ;;  %v615_v41 = vmul.f32 %v525_v8, %v311_v18  ;;  %v1100_v63 = vsel %vm886_vm1, %v611_v23, 0.0 }
  0xa6   :  { %v1205_v26 = vadd.f32 %v1204_v55, %v1203_v6  ;;  %v533_v12 = vmul.f32 0.6931472, %v1430_v7  ;;  %v1212_v50 = vsel %vm96_vm0, %v1098_v14, 0.0  ;;  %v1102_v16 = vsel %vm886_vm1, %v613_v62, 0.0 }
  0xa7   :  { %v1432_v60 = vpop.eup %1431  ;;  %v617_v61 = vmul.f32 %v529_v46, %v313_v40  ;;  %v1214_v31 = vsel %vm96_vm0, %v1100_v63, 0.0  ;;  %v1104_v51 = vsel %vm886_vm1, %v615_v41, 0.0  ;;  %v1216_v1 = vsel %vm96_vm0, %v1102_v16, 0.0 }
  0xa8   :  { %v1207_v54 = vadd.f32 %v1206_v29, %v1205_v26  ;;  %v537_v35 = vmul.f32 0.6931472, %v1432_v60  ;;  %v619_v36 = vmul.f32 %v533_v12, %v315_v13  ;;  %v1218_v9 = vsel %vm96_vm0, %v1104_v51, 0.0 }
  0xa9   :  { %v1434_v49 = vpop.eup %1433  ;;  %v1106_v10 = vsel %vm886_vm1, %v617_v61, 0.0 }
  0xaa   :  { %v1209_v44 = vadd.f32 %v1208_v3, %v1207_v54  ;;  %v541_v27 = vmul.f32 0.6931472, %v1434_v49  ;;  %v621_v22 = vmul.f32 %v537_v35, %v317_v45  ;;  %v1108_v47 = vsel %vm886_vm1, %v619_v36, 0.0  ;;  %v1120_v54 = vld [vmem:[#allocation2 + $0x8] sm:$0xff] }
  0xab   :  { %v1436_v17 = vpop.eup %1435  ;;  %v1220_v11 = vsel %vm96_vm0, %v1106_v10, 0.0  ;;  %v1222_v55 = vsel %vm96_vm0, %v1108_v47, 0.0 }
  0xac   :  { %v1211_v32 = vadd.f32 %v1210_v48, %v1209_v44  ;;  %v1438_v25 = vpop.eup %1437  ;;  %v545_v2 = vmul.f32 0.6931472, %v1436_v17  ;;  %v623_v52 = vmul.f32 %v541_v27, %v319_v28  ;;  %v1110_v15 = vsel %vm886_vm1, %v621_v22, 0.0 }
  0xad   :  { %v1440_v56 = vpop.eup %1439  ;;  %v549_v30 = vmul.f32 0.6931472, %v1438_v25  ;;  %v1224_v6 = vsel %vm96_vm0, %v1110_v15, 0.0 }
  0xae   :  { %v1213_v57 = vadd.f32 %v1212_v50, %v1211_v32  ;;  %v553_v0 = vmul.f32 0.6931472, %v1440_v56  ;;  %v625_v4 = vmul.f32 %v545_v2, %v321_v43  ;;  %v1112_v24 = vsel %vm886_vm1, %v623_v52, 0.0 }
  0xaf   :  { %v627_v59 = vmul.f32 %v549_v30, %v323_v58  ;;  %v1226_v8 = vsel %vm96_vm0, %v1112_v24, 0.0 }
  0xb0   :  { %v1215_v42 = vadd.f32 %v1214_v31, %v1213_v57  ;;  %v629_v33 = vmul.f32 %v553_v0, %v325_v39  ;;  %v1114_v20 = vsel %vm886_vm1, %v625_v4, 0.0 }
  0xb1   :  { %v1116_v23 = vsel %vm886_vm1, %v627_v59, 0.0  ;;  %v1228_v26 = vsel %vm96_vm0, %v1114_v20, 0.0 }
  0xb2   :  { %v1217_v38 = vadd.f32 %v1216_v1, %v1215_v42  ;;  %v1118_v7 = vsel %vm1042_vm3, %v629_v33, 0.0  ;;  %v1230_v3 = vsel %vm96_vm0, %v1116_v23, 0.0 }
  0xb3   :  { %v1232_v62 = vsel %vm96_vm0, %v1118_v7, 0.0 }
  0xb4   :  { %v1219_v21 = vadd.f32 %v1218_v9, %v1217_v38 }
  0xb6   :  { %v1221_v53 = vadd.f32 %v1220_v11, %v1219_v21 }
  0xb8   :  { %v1223_v29 = vadd.f32 %v1222_v55, %v1221_v53 }
  0xba   :  { %v1225_v34 = vadd.f32 %v1224_v6, %v1223_v29 }
  0xbc   :  { %v1227_v18 = vadd.f32 %v1226_v8, %v1225_v34 }
  0xbe   :  { %v1229_v46 = vadd.f32 %v1228_v26, %v1227_v18 }
  0xc0   :  { %v1231_v14 = vadd.f32 %v1230_v3, %v1229_v46 }
  0xc2   :  { %v1233_v60 = vadd.f32 %v1232_v62, %v1231_v14 }
  0xc4   :  { %v1235_v5 = vadd.f32 %v1233_v60, %v1120_v54 }
  0xc6   :  { %1237 = vst.msk [vmem:[#allocation2 + $0x8] sm:$0xff] %vm96_vm0, %v1235_v5 }
  0xcd   :  { %v1241_v40 = vld [vmem:[#allocation2 + $0x8] sm:$0xff] }
  0xce   :  { %v1243_v19 = vsel %vm96_vm0, %v1241_v40, 0.0 }
  0xcf   :  { %v1244_v48 = vadd.f32 %v1243_v19, %v1759_v37 }
  0xd1   :  { %1245 = vadd.xlane.f32.xlu0 %v1244_v48 }
 0x15e   :  { %v1246_v12 = vpop.xlane.xlu0 %1245 }
 0x15f   :  { %v1247_v41 = vrot.slane %v1246_v12, 4 }
 0x161   :  { %v1248_v63 = vadd.f32 %v1247_v41, %v1246_v12 }
 0x163   :  { %v1249_v44 = vrot.slane %v1248_v63, 2 }
 0x165   :  { %v1250_v49 = vadd.f32 %v1249_v44, %v1248_v63 }
 0x167   :  { %v1251_v13 = vrot.slane %v1250_v49, 1 }
 0x169   :  { %v1252_v50 = vadd.f32 %v1251_v13, %v1250_v49 }
 0x16b   :  { %1280 = vpush %v1252_v50 }
 0x19c   :  { %s1281_s22 = spop %1280 }
 0x19d   :  { %s1254_s23 = ssub.f32 0.0, %s1281_s22 }
 0x19f   :  { %v1255_v35 = vstv %s1254_s23 }
 0x1a0   :  { %1257 = vst.msk [vmem:[#allocation9] sm:$0x1] %vm1256_vm4, %v1255_v35 }
 0x1a1   :  { %1518 = shalt.err (!%p1515_p0)
}
 0x1a2   :  { %s1519_s28 = scalar_lea.hbm %s1846_s3, 16 }
 0x1a3   :  { %p1520_p1 = scmp.ne.s32.totalorder %s1846_s3, %s1519_s28  ;;  %p1523_p2 = scmp.lt.u32.totalorder %s1519_s28, %s1846_s3 }
 0x1a5   :  { %p1525_p3 = pnand %p1523_p2, %p1520_p1 }
 0x1a7   :  { %1528 = shalt.err (!%p1525_p3)
}
 0x1a8   :  { %1267 = dma.vmem_to_hbm [thread:$0]  %s1265_s21, 16, %s1846_s3, [#allocation5]  }
 0x1a9   :  { %1533 = dma.done.wait [#allocation5], 16  }
 0x1aa   :  { %1534 = vsyncadd [#allocation5], 4294967280 }
 0x1ab   :  { %1271 = vsyncpa [#allocation4], 1 }
 0x1ac   :  { %1272 = vsyncpa [#allocation7], 1 }
 0x1ad   :  { %1273 = vsyncpa [#allocation5], 1 }

</bundles_post_ra>
